<compile_context>
chip_gen: v6e
topology: v6e:2x2x1
jax: 0.10.0
libtpu: 0.0.40
codegen_flags: <defaults>
</compile_context>

<pallas_src>
import functools

import jax
import jax.numpy as jnp
from jax.experimental import pallas as pl
from jax.experimental.pallas import tpu as pltpu


def _round_up(n, m):
    return -(-n // m) * m


def actor_kernel(x_ref, w_ref, b_ref, out_ref, *, o_dim, a_dim, h_dim, offs):
    """x_ref:  [o_dim, tb] f32   (batch on the lane axis)
    w_ref:  packed bf16 weights [wrows, wcols]
            W1^T at rows [0, h_dim), cols [0, o_dim)
            W2^T at rows [off_w2, off_w2 + a_dim), cols [0, h_dim)
    b_ref:  packed f32 biases [brows, 1]
            b1 at rows [0, h_dim), b2 at rows [off_b2, off_b2 + a_dim)
    out_ref: [a_dim, tb] f32."""
    off_w2, off_b2 = offs

    x = x_ref[...].astype(jnp.bfloat16)                       # [o_dim, tb]
    w1t = w_ref[0:h_dim, 0:o_dim]                              # [h_dim, o_dim] bf16
    w2t = w_ref[off_w2:off_w2 + a_dim, 0:h_dim]                # [a_dim, h_dim] bf16
    b1 = b_ref[0:h_dim, :]                                     # [h_dim, 1] f32
    b2 = b_ref[off_b2:off_b2 + a_dim, :]                       # [a_dim, 1] f32

    # Layer 1 (transposed): h^T = relu(W1^T @ x^T + b1)  -> [h_dim, tb]
    # bf16 MXU inputs, f32 accumulation; bias/ReLU stay f32 (v5e-safe).
    h = jnp.dot(w1t, x, preferred_element_type=jnp.float32) + b1
    h = jnp.maximum(h, 0.0).astype(jnp.bfloat16)

    # Layer 2 (transposed): y^T = tanh(W2^T @ h^T + b2)  -> [a_dim, tb]
    y = jnp.dot(w2t, h, preferred_element_type=jnp.float32) + b2
    out_ref[...] = jnp.tanh(y).astype(out_ref.dtype)


def pack_params(params, o_dim, a_dim, h_dim):
    """Pack transposed weights into one bf16 buffer (16-row-aligned sections,
    bf16 packs 2 rows per sublane) and biases into a small f32 column buffer."""
    wcols = max(o_dim, h_dim)
    off_w2 = _round_up(h_dim, 16)
    wrows = off_w2 + _round_up(a_dim, 16)
    wbuf = jnp.zeros((wrows, wcols), jnp.bfloat16)
    wbuf = wbuf.at[0:h_dim, 0:o_dim].set(params["w1"].T.astype(jnp.bfloat16))
    wbuf = wbuf.at[off_w2:off_w2 + a_dim, 0:h_dim].set(
        params["w2"].T.astype(jnp.bfloat16))

    off_b2 = _round_up(h_dim, 8)
    brows = off_b2 + _round_up(a_dim, 8)
    bbuf = jnp.zeros((brows, 1), jnp.float32)
    bbuf = bbuf.at[0:h_dim, 0].set(params["b1"])
    bbuf = bbuf.at[off_b2:off_b2 + a_dim, 0].set(params["b2"])

    return wbuf, bbuf, (off_w2, off_b2)


def _choose_tb(B):
    """Batch tile (lane axis).  Small B: single tile.  Large B: big tiles
    (up to 8192 lanes) with >= 2 grid steps so v7x's 2 TCs both get work."""
    if B <= 1024:
        return B
    return min(8192, _round_up(-(-B // 2), 128))


def actor_forward(obs, w_packed, b_packed, offs, *, o_dim, a_dim, h_dim):
    B = obs.shape[0]
    tb = _choose_tb(B)
    grid = (pl.cdiv(B, tb),)

    # Layout plumbing: put the batch on the lane axis.
    xT = obs.T  # [o_dim, B]

    kernel = functools.partial(actor_kernel, o_dim=o_dim, a_dim=a_dim,
                               h_dim=h_dim, offs=offs)

    flops = 2 * B * (o_dim * h_dim + h_dim * a_dim)
    bytes_accessed = (xT.size * 4            # obs, f32
                      + w_packed.size * 2    # weights, bf16
                      + b_packed.size * 4    # biases, f32
                      + B * a_dim * 4)       # output, f32
    cost = pl.CostEstimate(flops=flops, transcendentals=B * a_dim,
                           bytes_accessed=bytes_accessed)

    outT = pl.pallas_call(
        kernel,
        out_shape=jax.ShapeDtypeStruct((a_dim, B), jnp.float32),
        grid=grid,
        in_specs=[
            pl.BlockSpec((o_dim, tb), lambda i: (0, i)),      # batch-tiled obs^T
            pl.BlockSpec(w_packed.shape, lambda i: (0, 0)),   # weights: VMEM-resident
            pl.BlockSpec(b_packed.shape, lambda i: (0, 0)),   # biases:  VMEM-resident
        ],
        out_specs=pl.BlockSpec((a_dim, tb), lambda i: (0, i)),
        compiler_params=pltpu.CompilerParams(
            dimension_semantics=("parallel",)),
        cost_estimate=cost,
    )(xT, w_packed, b_packed)

    return outT.T  # [B, a_dim]


def init_params(key, o_dim, a_dim, h_dim):
    """PyTorch-default-style init: U(-1/sqrt(fan_in), 1/sqrt(fan_in))."""
    ks = jax.random.split(key, 4)

    def lin(kw, kb, fan_in, fan_out):
        bound = 1.0 / (fan_in ** 0.5)
        w = jax.random.uniform(kw, (fan_in, fan_out), jnp.float32, -bound, bound)
        b = jax.random.uniform(kb, (fan_out,), jnp.float32, -bound, bound)
        return w, b

    w1, b1 = lin(ks[0], ks[1], o_dim, h_dim)
    w2, b2 = lin(ks[2], ks[3], h_dim, a_dim)
    return {"w1": w1, "b1": b1, "w2": w2, "b2": b2}


def reference_forward_mixed(x, params):
    """Mirrors the kernel numerics (bf16 matmul inputs, f32 accumulate)."""
    bf = jnp.bfloat16
    h = jnp.dot(x.astype(bf), params["w1"].astype(bf),
                preferred_element_type=jnp.float32) + params["b1"]
    h = jnp.maximum(h, 0.0).astype(bf)
    y = jnp.dot(h, params["w2"].astype(bf),
                preferred_element_type=jnp.float32) + params["b2"]
    return jnp.tanh(y)


def reference_forward_f32(x, params):
    """Pure f32 reference of the PyTorch module semantics."""
    h = jax.nn.relu(x @ params["w1"] + params["b1"])
    return jnp.tanh(h @ params["w2"] + params["b2"])


if __name__ == "__main__":
    B, O_DIM, A_DIM, H_DIM = 8, 16, 4, 32

    key = jax.random.PRNGKey(0)
    k_x, k_p = jax.random.split(key, 2)

    x = jax.random.normal(k_x, (B, O_DIM), jnp.float32)
    params = init_params(k_p, O_DIM, A_DIM, H_DIM)
    w_packed, b_packed, offs = pack_params(params, O_DIM, A_DIM, H_DIM)

    act = jax.block_until_ready(
        actor_forward(x, w_packed, b_packed, offs,
                      o_dim=O_DIM, a_dim=A_DIM, h_dim=H_DIM))

    act_ref_mixed = reference_forward_mixed(x, params)
    act_ref_f32 = reference_forward_f32(x, params)

    assert act.shape == (B, A_DIM), act.shape
    # Tight check against a reference with identical bf16/f32 math.
    assert jnp.allclose(act, act_ref_mixed, atol=1e-4, rtol=1e-4), (act, act_ref_mixed)
    # Loose check vs full-f32 PyTorch-equivalent semantics (bf16 MXU inputs).
    assert jnp.allclose(act, act_ref_f32, atol=5e-2, rtol=5e-2), (act, act_ref_f32)
    print("KERNEL_OK")
</pallas_src>

<mosaic_0001>
module attributes {stable_mosaic.version = 11 : i64} {
  func.func @actor_kernel(%arg0: i32, %arg1: memref<16x8xf32, #tpu.memory_space<vmem>>, %arg2: memref<48x32xbf16, #tpu.memory_space<vmem>>, %arg3: memref<40x1xf32, #tpu.memory_space<vmem>>, %arg4: memref<4x8xf32, #tpu.memory_space<vmem>>) attributes {dimension_semantics = [#tpu.dimension_semantics<parallel>], iteration_bounds = array<i64: 1>, scalar_prefetch = 0 : i64, scratch_operands = 0 : i64, tpu.core_type = #tpu.core_type<tc>, window_params = [{transform_indices = @transform_0, window_bounds = array<i64: 16, 8>}, {pipeline_mode = #tpu.pipeline_mode<synchronous>, transform_indices = @transform_1, window_bounds = array<i64: 48, 32>}, {pipeline_mode = #tpu.pipeline_mode<synchronous>, transform_indices = @transform_2, window_bounds = array<i64: 40, 1>}, {transform_indices = @transform_3, window_bounds = array<i64: 4, 8>}]} {
    %c0 = arith.constant 0 : index
    %c0_0 = arith.constant 0 : index
    %0 = vector.load %arg1[%c0, %c0_0] : memref<16x8xf32, #tpu.memory_space<vmem>>, vector<16x8xf32>
    %1 = arith.truncf %0 : vector<16x8xf32> to vector<16x8xbf16>
    %c0_1 = arith.constant 0 : index
    %c0_2 = arith.constant 0 : index
    %2 = vector.load %arg2[%c0_1, %c0_2] : memref<48x32xbf16, #tpu.memory_space<vmem>>, vector<32x16xbf16>
    %c32 = arith.constant 32 : index
    %c0_3 = arith.constant 0 : index
    %3 = vector.load %arg2[%c32, %c0_3] : memref<48x32xbf16, #tpu.memory_space<vmem>>, vector<4x32xbf16>
    %c0_4 = arith.constant 0 : index
    %c0_5 = arith.constant 0 : index
    %4 = vector.load %arg3[%c0_4, %c0_5] : memref<40x1xf32, #tpu.memory_space<vmem>>, vector<32x1xf32>
    %c32_6 = arith.constant 32 : index
    %c0_7 = arith.constant 0 : index
    %5 = vector.load %arg3[%c32_6, %c0_7] : memref<40x1xf32, #tpu.memory_space<vmem>>, vector<4x1xf32>
    %cst = arith.constant dense<0.000000e+00> : vector<32x8xf32>
    %6 = tpu.matmul %2, %1, %cst {dimension_numbers = #tpu.dot_dimension_numbers<[1], [0], [0], [1], [0, 0, 1, 1], [], []>} : vector<32x16xbf16>, vector<16x8xbf16>, vector<32x8xf32> -> vector<32x8xf32>
    %7 = vector.broadcast %4 : vector<32x1xf32> to vector<32x8xf32>
    %8 = arith.addf %6, %7 : vector<32x8xf32>
    %cst_8 = arith.constant 0.000000e+00 : f32
    %9 = vector.broadcast %cst_8 : f32 to vector<32x8xf32>
    %10 = arith.maximumf %8, %9 : vector<32x8xf32>
    %11 = arith.truncf %10 : vector<32x8xf32> to vector<32x8xbf16>
    %cst_9 = arith.constant dense<0.000000e+00> : vector<4x8xf32>
    %12 = tpu.matmul %3, %11, %cst_9 {dimension_numbers = #tpu.dot_dimension_numbers<[1], [0], [0], [1], [0, 0, 1, 1], [], []>} : vector<4x32xbf16>, vector<32x8xbf16>, vector<4x8xf32> -> vector<4x8xf32>
    %13 = vector.broadcast %5 : vector<4x1xf32> to vector<4x8xf32>
    %14 = arith.addf %12, %13 : vector<4x8xf32>
    %15 = math.tanh %14 : vector<4x8xf32>
    %c0_10 = arith.constant 0 : index
    %c0_11 = arith.constant 0 : index
    %16 = vector.load %arg4[%c0_10, %c0_11] : memref<4x8xf32, #tpu.memory_space<vmem>>, vector<4x8xf32>
    tpu.vector_store %arg4[%c0_10, %c0_11], %15 {strides = array<i32>} : memref<4x8xf32, #tpu.memory_space<vmem>>, vector<4x8xf32>,
    return
  }
  func.func @transform_0(%arg0: i32) -> (i32, i32) {
    %c0_i32 = arith.constant 0 : i32
    %c0_i32_0 = arith.constant 0 : i32
    return %c0_i32, %arg0 : i32, i32
  }
  func.func @transform_1(%arg0: i32) -> (i32, i32) {
    %c0_i32 = arith.constant 0 : i32
    %c0_i32_0 = arith.constant 0 : i32
    %c0_i32_1 = arith.constant 0 : i32
    return %c0_i32, %c0_i32_0 : i32, i32
  }
  func.func @transform_2(%arg0: i32) -> (i32, i32) {
    %c0_i32 = arith.constant 0 : i32
    %c0_i32_0 = arith.constant 0 : i32
    %c0_i32_1 = arith.constant 0 : i32
    return %c0_i32, %c0_i32_0 : i32, i32
  }
  func.func @transform_3(%arg0: i32) -> (i32, i32) {
    %c0_i32 = arith.constant 0 : i32
    %c0_i32_0 = arith.constant 0 : i32
    return %c0_i32, %arg0 : i32, i32
  }
}

</mosaic_0001>

<bundles_post_ra>
// kernel: tpu_custom_call.1
= control target key start
LH: loop header
LB: loop body
LE: loop exit
PB: predicated region body
PF: predicated region fallthrough
CT: control target
= control target key end

     0   :  { %vm59_vm0 = vcmask 130048   ;;  %v244_v4 = vmov 0   ;;  %s303_s0 = inlined_call_operand.vmem [shape: f32[16,8], index: 0, kind: input, shape index: {}]   ;;  %s304_s1 = inlined_call_operand.vmem [shape: bf16[48,32], index: 1, kind: input, shape index: {}]   ;;  %s305_s2 = inlined_call_operand.vmem [shape: f32[40,1], index: 2, kind: input, shape index: {}]   ;;  %s306_s3 = inlined_call_operand.hbm [shape: f32[4,8], index: 3, kind: output, shape index: {}]  }
   0x1   :  { %v16_v0 = vld [vmem:[%s303_s0] sm:$0xff]  ;;  %v17_v1 = vld [vmem:[%s303_s0 + $0x8] sm:$0xff]  ;;  %216 = vset.pattern.permute.xlu0 %v244_v4  ;;  %217 = vset.pattern.permute.xlu1 %v244_v4  ;;  %v26_v5 = vld [vmem:[%s305_s2 + $0x10] sm:$0xff] }
   0x2   :  { %v18_v2 = vpack.c.bf16 %v17_v1, %v16_v0  ;;  %v218_v3 = vld [vmem:[%s304_s1] sm:$0xff]   ;;  %v219_v6 = vld [vmem:[%s304_s1 + $0x8] sm:$0xff]   ;;  %41 = vperm.xlu0 %216, %v26_v5  }
   0x3   :  { %200 = vmatprep.mubr.msk.bf16.mxu0 %vm59_vm0, %v218_v3  ;;  %v24_v7 = vld [vmem:[%s305_s2] sm:$0xff] }
   0x4   :  { %198 = vmatprep.subr.bf16.mxu0 %v18_v2 }
   0x5   :  { %199 = vmatpush3.bf16.msra.mxu0 %v18_v2 }
   0x6   :  { %8 = vsyncpa [#allocation3], 0  ;;  %v27_v8 = vld [vmem:[%s305_s2 + $0x18] sm:$0xff]  ;;  %31 = vperm.xlu1 %217, %v24_v7   ;;  %v25_v9 = vld [vmem:[%s305_s2 + $0x8] sm:$0xff]  ;;  %v245_v11 = vmov 0.0   ;;  %vm246_vm1 = vmmov 0  }
   0x7   :  { %46 = vperm.xlu0 %216, %v27_v8   ;;  %v28_v10 = vld [vmem:[%s305_s2 + $0x20] sm:$0xf]  ;;  %204 = vmatprep.subr.bf16.mxu1 %v245_v11  ;;  %v23_v30 = vld [vmem:[%s304_s1 + $0x10] sm:$0x3]  ;;  %vm126_vm2 = vcmask 261120   ;;  %s247_s30 = smov [#allocation2]  }
   0x8   :  { %201 = vmatmul.mubr.msk.bf16.vlgmr.msra.gmra.mxu0 %vm59_vm0, %v219_v6  ;;  %208 = vmatprep.mubr.msk.bf16.mxu1 %vm246_vm1, %v245_v11  ;;  %s179_s4 = sshll.u32 %s247_s30, 4  ;;  %vm171_vm3 = vcmask 60416   ;;  %s180_s4 = int_to_ptr.vmem [resolvable:$true] %s179_s4 }
   0x9   :  { %s222_s5 = scalar_lea.vmem %s180_s4, 64  ;;  %p227_p1 = scmp.lt.s32.totalorder %s180_s4, %s180_s4 }
   0xa   :  { %36 = vperm.xlu1 %217, %v25_v9   ;;  %p223_p0 = scmp.ne.s32.totalorder %s180_s4, %s222_s5  ;;  %p228_p2 = scmp.lt.s32.totalorder %s222_s5, %s222_s5 }
   0xb   :  { %123 = vperm.xlu0 %216, %v28_v10  }
   0xc   :  { %p229_p3 = por %p228_p2, %p227_p1 }
   0xe   :  { %p230_p4 = pnand %p229_p3, %p223_p0 }
  0x7d   :  { %v42_v12 = vpop.permute.xlu0 %41 }
  0x81   :  { %v32_v13 = vpop.permute.xlu1 %31 }
  0x82   :  { %v47_v17 = vpop.permute.xlu0 %46 }
  0x85   :  { %v37_v20 = vpop.permute.xlu1 %36 }
  0x86   :  { %v124_v31 = vpop.permute.xlu0 %123 }
  0xc8   :  { %v202_v14 = vpop.f32.mrf.mxu0 }
  0xc9   :  { %v109_v16 = vadd.f32 %v202_v14, %v42_v12 }
  0xca   :  { %v100_v15 = vpop.f32.mrf.mxu0 }
  0xcb   :  { %v117_v22 = vmax.f32 %v109_v16, 0.0  ;;  %v101_v23 = vadd.f32 %v100_v15, %v32_v13 }
  0xcc   :  { %v203_v18 = vpop.f32.mrf.mxu0 }
  0xcd   :  { %v112_v19 = vadd.f32 %v203_v18, %v47_v17  ;;  %v115_v28 = vmax.f32 %v101_v23, 0.0 }
  0xce   :  { %v103_v21 = vpop.f32.mrf.mxu0 }
  0xcf   :  { %v118_v24 = vmax.f32 %v112_v19, 0.0  ;;  %v104_v25 = vadd.f32 %v103_v21, %v37_v20 }
  0xd1   :  { %v116_v26 = vmax.f32 %v104_v25, 0.0  ;;  %v120_v27 = vpack.c.bf16 %v118_v24, %v117_v22 }
  0xd3   :  { %205 = vmatpush3.bf16.msra.mxu1 %v120_v27  ;;  %v119_v29 = vpack.c.bf16 %v116_v26, %v115_v28 }
  0xd4   :  { %206 = vmatprep.subr.bf16.mxu1 %v245_v11 }
  0xd7   :  { %207 = vmatpush3.bf16.msra.mxu1 %v119_v29 }
  0xda   :  { %209 = vmatmul.mubr.msk.bf16.vlgmr.msra.gmra.mxu1 %vm126_vm2, %v23_v30 }
 0x19a   :  { %v164_v32 = vpop.f32.mrf.mxu1 }
 0x19b   :  { %v165_v33 = vadd.f32 %v164_v32, %v124_v31 }
 0x19c   :  { %v210_v34 = vpop.f32.mrf.mxu1 }
 0x19d   :  { %220 = vtanh.f32 %v165_v33 }
 0x19e   :  { %v167_v35 = vpop.f32.mrf.mxu1 }
 0x1a0   :  { %v211_v36 = vpop.f32.mrf.mxu1 }
 0x1aa   :  { %v221_v37 = vpop.eup %220 }
 0x1ab   :  { %172 = vst.msk [vmem:[#allocation2] sm:$0xf] %vm171_vm3, %v221_v37 }
 0x1ac   :  { %233 = shalt.err (!%p230_p4)
}
 0x1ad   :  { %182 = dma.vmem_to_hbm [thread:$0]  %s180_s4, 64, %s306_s3, [#allocation3]  }
 0x1ae   :  { %242 = dma.done.wait [#allocation3], 64  }
 0x1af   :  { %243 = vsyncadd [#allocation3], 4294967232 }
 0x1b0   :  { %186 = vsyncpa [#allocation3], 1 }

</bundles_post_ra>
